<compile_context>
chip_gen: v5e
topology: v5e:2x2
jax: 0.10.0
libtpu: 0.0.40
codegen_flags: <defaults>
</compile_context>

<pallas_src>
import numpy as np

import jax
import jax.numpy as jnp
from jax import lax
from jax.experimental import pallas as pl
from jax.experimental.pallas import tpu as pltpu


def _round_up(v, m):
    return ((v + m - 1) // m) * m


def _vmem_capacity_bytes(default=64 << 20):
    """Physical VMEM of the local chip (conservative fallback: v7x's 64 MiB)."""
    try:
        return int(pltpu.get_tpu_info().vmem_capacity_bytes)
    except Exception:
        return default


def _auto_tile_n(q, D, w_item, budget=4 << 20):
    """Column (matmul-N) tile for the effective weight W_eff of shape (D, q)."""
    if q * D * w_item <= budget:
        return q          # weight tail fits resident -> single column block
    # Large weight tail: stream it over a second grid axis.
    assert q % 128 == 0, "large q must be a multiple of 128 to tile the weight tail"
    tn = max(128, (budget // (D * w_item)) // 128 * 128)
    while q % tn:
        tn -= 128
    return tn


def _auto_tile_m(M, D, tile_n, x_item, w_block_bytes, vmem_cap):
    """Row tile: MXU aligned, VMEM aware, and >= 2 row programs for megacore."""
    # Reserve the (double-buffered) weight block + bias + internal scratch, then
    # fit the double-buffered x and tail-out tiles into roughly half of VMEM.
    budget = max(4 << 20, vmem_cap // 2 - 2 * w_block_bytes - (2 << 20))
    per_row = 2 * (D + tile_n) * x_item              # x + out tiles, double buffered
    cap_rows = max(8, budget // per_row)
    row_cap = 1024 if vmem_cap > (64 << 20) else 512  # v5e/v6e vs v7x
    two_core_cap = _round_up((M + 1) // 2, 8)         # >= 2 programs -> 2 TCs on v7x
    tile = min(row_cap, cap_rows, two_core_cap, _round_up(M, 8))
    return max(8, (tile // 8) * 8)


def picard_tail_kernel(x_ref, w_ref, b_ref, o_ref):
    """x_ref: (tile_m, D); w_ref: (D, tile_n); b_ref: (1, tile_n) f32;
    o_ref: (tile_m, tile_n).   o = x @ W_eff + b_eff  (f32 accumulate on MXU)."""
    acc = jnp.dot(x_ref[...], w_ref[...], preferred_element_type=jnp.float32)
    o_ref[...] = (acc + b_ref[...]).astype(o_ref.dtype)


def _block_spec(shape, index_map, buffer_count=None):
    if buffer_count is None:
        return pl.BlockSpec(shape, index_map)
    return pl.BlockSpec(shape, index_map, pipeline_mode=pl.Buffered(buffer_count))


def picard_step(x, w, b, *, q, r, tile_m=None, tile_n=None):
    """x: (B, S, D); w: (D, D) PyTorch-Linear weight; b: (D,)."""
    B, S, D = x.shape
    # NOTE: q == 0 is ambiguous in the PyTorch module (x[..., -0:] is the whole
    # tensor); require 1 <= q <= D.
    assert 1 <= q <= D, "q must satisfy 1 <= q <= D"
    M = B * S
    keep = D - q
    r = float(r)

    xf = x.reshape(M, D)
    w = jnp.asarray(w)
    b = jnp.asarray(b)

    # Fold the relaxation into an effective affine map for the tail (built in
    # (K=D, N=q) layout so the RHS feeds the MXU directly, no transpose).
    w_eff = ((1.0 - r) * w[keep:, :].astype(jnp.float32).T
             + r * jnp.eye(D, q, k=-keep, dtype=jnp.float32))
    w_eff = w_eff.astype(x.dtype)                       # MXU feed dtype = x dtype
    b_eff = ((1.0 - r) * b[keep:].astype(jnp.float32)).reshape(1, q)

    x_item = np.dtype(x.dtype).itemsize
    vmem_cap = _vmem_capacity_bytes()
    if tile_n is None:
        tile_n = _auto_tile_n(q, D, x_item)
    w_block_bytes = D * tile_n * x_item
    if tile_m is None:
        tile_m = _auto_tile_m(M, D, tile_n, x_item, w_block_bytes, vmem_cap)

    grid = (pl.cdiv(M, tile_m), pl.cdiv(q, tile_n))

    # Double-buffered x / tail-out tiles + weight block(s) + bias + headroom,
    # clamped to <= 80% of the chip's physical VMEM (96 MiB would be illegal on v7x).
    need = (2 * tile_m * (D + tile_n) * x_item + 2 * w_block_bytes
            + 2 * tile_n * 4 + (2 << 20))
    vmem_limit = int(min(max(need, 16 << 20), (vmem_cap * 4) // 5))

    cost = pl.CostEstimate(
        flops=2 * M * D * q,
        transcendentals=0,
        bytes_accessed=int(M * D * x_item            # read x
                           + M * q * x_item          # write blended tail only
                           + D * q * x_item          # effective weight
                           + q * 4),                 # effective bias (f32)
    )

    def run(single_buffer_resident):
        # W_eff / b_eff are grid-constant when grid[1] == 1; single-buffering
        # them halves their VMEM footprint.  Fallback: default double buffering.
        wb = 1 if single_buffer_resident else None
        return pl.pallas_call(
            picard_tail_kernel,
            out_shape=jax.ShapeDtypeStruct((M, q), x.dtype),
            grid_spec=pltpu.PrefetchScalarGridSpec(
                num_scalar_prefetch=0,
                grid=grid,
                in_specs=[
                    pl.BlockSpec((tile_m, D), lambda i, j: (i, 0)),      # x row tile
                    _block_spec((D, tile_n), lambda i, j: (0, j), wb),   # W_eff block
                    _block_spec((1, tile_n), lambda i, j: (0, j), wb),   # b_eff block
                ],
                out_specs=pl.BlockSpec((tile_m, tile_n), lambda i, j: (i, j)),
            ),
            compiler_params=pltpu.CompilerParams(
                dimension_semantics=("parallel", "arbitrary"),
                vmem_limit_bytes=vmem_limit,
            ),
            cost_estimate=cost,
        )(xf, w_eff, b_eff)

    # NOTE: if M % tile_m != 0 the last row block reads past the end of xf;
    # rows are independent (per-row matmul) and Pallas masks the OOB writeback,
    # so padded rows only produce discarded output.
    if grid[1] == 1:
        try:
            tail = run(True)
        except Exception:   # pl.Buffered(1) unsupported -> keep default buffering
            tail = run(False)
    else:
        tail = run(False)

    # Stitch: the passthrough columns are never written by the kernel.  Under
    # jit with x donated this update happens in place (no extra M*D copy).
    out = lax.dynamic_update_slice(xf, tail, (0, keep))
    return out.reshape(B, S, D)


def picard_step_ref(x, w, b, *, q, r):
    """float64 NumPy reference of the PyTorch module with model = Linear(W, b)."""
    x64 = np.asarray(x, dtype=np.float64)
    w64 = np.asarray(w, dtype=np.float64)
    b64 = np.asarray(b, dtype=np.float64)
    z = x64 @ w64.T + b64
    y = r * x64[..., -q:] + (1.0 - r) * z[..., -q:]
    return np.concatenate([x64[..., :-q], y], axis=-1)


if __name__ == "__main__":
    # Small self-test shapes (production: D and q multiples of 128).
    B, S, D = 2, 8, 32
    q, r = 8, 0.5

    key = jax.random.PRNGKey(0)
    kx, kw, kb = jax.random.split(key, 3)
    x = jax.random.normal(kx, (B, S, D), dtype=jnp.float32)
    # deterministic "Linear" params for the inner model T
    w = jax.random.normal(kw, (D, D), dtype=jnp.float32) * (1.0 / jnp.sqrt(D))
    b = jax.random.normal(kb, (D,), dtype=jnp.float32) * 0.1

    out = jax.block_until_ready(picard_step(x, w, b, q=q, r=r))
    assert out.shape == (B, S, D)

    ref = picard_step_ref(x, w, b, q=q, r=r)
    out64 = np.asarray(out, dtype=np.float64)
    x64 = np.asarray(x, dtype=np.float64)
    # Passthrough columns are never touched by the kernel -> bit-exact.
    assert np.array_equal(out64[..., : D - q], x64[..., : D - q]), "passthrough mismatch"
    # Blended tail: tolerance covers MXU f32 pass-count differences vs. f64 reference.
    assert np.allclose(out64[..., D - q:], ref[..., D - q:], atol=5e-3, rtol=5e-3), (
        "tail mismatch vs reference")

    print("KERNEL_OK")
</pallas_src>

<mosaic_0001>
module attributes {stable_mosaic.version = 11 : i64} {
  func.func @picard_tail_kernel(%arg0: i32, %arg1: i32, %arg2: memref<8x32xf32, #tpu.memory_space<vmem>>, %arg3: memref<32x8xf32, #tpu.memory_space<vmem>>, %arg4: memref<1x8xf32, #tpu.memory_space<vmem>>, %arg5: memref<8x8xf32, #tpu.memory_space<vmem>>) attributes {dimension_semantics = [#tpu.dimension_semantics<parallel>, #tpu.dimension_semantics<arbitrary>], iteration_bounds = array<i64: 2, 1>, scalar_prefetch = 0 : i64, scratch_operands = 0 : i64, tpu.core_type = #tpu.core_type<tc>, window_params = [{transform_indices = @transform_0, window_bounds = array<i64: 8, 32>}, {pipeline_mode = #tpu.pipeline_mode<synchronous>, transform_indices = @transform_1, window_bounds = array<i64: 32, 8>}, {pipeline_mode = #tpu.pipeline_mode<synchronous>, transform_indices = @transform_2, window_bounds = array<i64: 1, 8>}, {transform_indices = @transform_3, window_bounds = array<i64: 8, 8>}]} {
    %c0 = arith.constant 0 : index
    %c0_0 = arith.constant 0 : index
    %0 = vector.load %arg2[%c0, %c0_0] : memref<8x32xf32, #tpu.memory_space<vmem>>, vector<8x32xf32>
    %c0_1 = arith.constant 0 : index
    %c0_2 = arith.constant 0 : index
    %1 = vector.load %arg3[%c0_1, %c0_2] : memref<32x8xf32, #tpu.memory_space<vmem>>, vector<32x8xf32>
    %cst = arith.constant dense<0.000000e+00> : vector<8x8xf32>
    %2 = tpu.matmul %0, %1, %cst {dimension_numbers = #tpu.dot_dimension_numbers<[1], [0], [0], [1], [0, 0, 1, 1], [], []>} : vector<8x32xf32>, vector<32x8xf32>, vector<8x8xf32> -> vector<8x8xf32>
    %c0_3 = arith.constant 0 : index
    %c0_4 = arith.constant 0 : index
    %3 = vector.load %arg4[%c0_3, %c0_4] : memref<1x8xf32, #tpu.memory_space<vmem>>, vector<1x8xf32>
    %4 = vector.broadcast %3 : vector<1x8xf32> to vector<8x8xf32>
    %5 = arith.addf %2, %4 : vector<8x8xf32>
    %c0_5 = arith.constant 0 : index
    %c0_6 = arith.constant 0 : index
    %6 = vector.load %arg5[%c0_5, %c0_6] : memref<8x8xf32, #tpu.memory_space<vmem>>, vector<8x8xf32>
    tpu.vector_store %arg5[%c0_5, %c0_6], %5 {strides = array<i32>} : memref<8x8xf32, #tpu.memory_space<vmem>>, vector<8x8xf32>,
    return
  }
  func.func @transform_0(%arg0: i32, %arg1: i32) -> (i32, i32) {
    %c0_i32 = arith.constant 0 : i32
    %c0_i32_0 = arith.constant 0 : i32
    return %arg0, %c0_i32 : i32, i32
  }
  func.func @transform_1(%arg0: i32, %arg1: i32) -> (i32, i32) {
    %c0_i32 = arith.constant 0 : i32
    %c0_i32_0 = arith.constant 0 : i32
    return %c0_i32, %arg1 : i32, i32
  }
  func.func @transform_2(%arg0: i32, %arg1: i32) -> (i32, i32) {
    %c0_i32 = arith.constant 0 : i32
    %c0_i32_0 = arith.constant 0 : i32
    return %c0_i32, %arg1 : i32, i32
  }
  func.func @transform_3(%arg0: i32, %arg1: i32) -> (i32, i32) {
    %c0_i32 = arith.constant 0 : i32
    return %arg0, %arg1 : i32, i32
  }
}

module attributes {stable_mosaic.version = 11 : i64} {
  func.func @picard_tail_kernel(%arg0: i32, %arg1: i32, %arg2: memref<8x32xf32, #tpu.memory_space<vmem>>, %arg3: memref<32x8xf32, #tpu.memory_space<vmem>>, %arg4: memref<1x8xf32, #tpu.memory_space<vmem>>, %arg5: memref<8x8xf32, #tpu.memory_space<vmem>>) attributes {dimension_semantics = [#tpu.dimension_semantics<parallel>, #tpu.dimension_semantics<arbitrary>], iteration_bounds = array<i64: 2, 1>, scalar_prefetch = 0 : i64, scratch_operands = 0 : i64, tpu.core_type = #tpu.core_type<tc>, window_params = [{transform_indices = @transform_0, window_bounds = array<i64: 8, 32>}, {transform_indices = @transform_1, window_bounds = array<i64: 32, 8>}, {transform_indices = @transform_2, window_bounds = array<i64: 1, 8>}, {transform_indices = @transform_3, window_bounds = array<i64: 8, 8>}]} {
    %c0 = arith.constant 0 : index
    %c0_0 = arith.constant 0 : index
    %0 = vector.load %arg2[%c0, %c0_0] : memref<8x32xf32, #tpu.memory_space<vmem>>, vector<8x32xf32>
    %c0_1 = arith.constant 0 : index
    %c0_2 = arith.constant 0 : index
    %1 = vector.load %arg3[%c0_1, %c0_2] : memref<32x8xf32, #tpu.memory_space<vmem>>, vector<32x8xf32>
    %cst = arith.constant dense<0.000000e+00> : vector<8x8xf32>
    %2 = tpu.matmul %0, %1, %cst {dimension_numbers = #tpu.dot_dimension_numbers<[1], [0], [0], [1], [0, 0, 1, 1], [], []>} : vector<8x32xf32>, vector<32x8xf32>, vector<8x8xf32> -> vector<8x8xf32>
    %c0_3 = arith.constant 0 : index
    %c0_4 = arith.constant 0 : index
    %3 = vector.load %arg4[%c0_3, %c0_4] : memref<1x8xf32, #tpu.memory_space<vmem>>, vector<1x8xf32>
    %4 = vector.broadcast %3 : vector<1x8xf32> to vector<8x8xf32>
    %5 = arith.addf %2, %4 : vector<8x8xf32>
    %c0_5 = arith.constant 0 : index
    %c0_6 = arith.constant 0 : index
    %6 = vector.load %arg5[%c0_5, %c0_6] : memref<8x8xf32, #tpu.memory_space<vmem>>, vector<8x8xf32>
    tpu.vector_store %arg5[%c0_5, %c0_6], %5 {strides = array<i32>} : memref<8x8xf32, #tpu.memory_space<vmem>>, vector<8x8xf32>,
    return
  }
  func.func @transform_0(%arg0: i32, %arg1: i32) -> (i32, i32) {
    %c0_i32 = arith.constant 0 : i32
    %c0_i32_0 = arith.constant 0 : i32
    return %arg0, %c0_i32 : i32, i32
  }
  func.func @transform_1(%arg0: i32, %arg1: i32) -> (i32, i32) {
    %c0_i32 = arith.constant 0 : i32
    %c0_i32_0 = arith.constant 0 : i32
    return %c0_i32, %arg1 : i32, i32
  }
  func.func @transform_2(%arg0: i32, %arg1: i32) -> (i32, i32) {
    %c0_i32 = arith.constant 0 : i32
    %c0_i32_0 = arith.constant 0 : i32
    return %c0_i32, %arg1 : i32, i32
  }
  func.func @transform_3(%arg0: i32, %arg1: i32) -> (i32, i32) {
    %c0_i32 = arith.constant 0 : i32
    return %arg0, %arg1 : i32, i32
  }
}

</mosaic_0001>

<bundles_post_ra>
// kernel: tpu_custom_call.1
= control target key start
LH: loop header
LB: loop body
LE: loop exit
PB: predicated region body
PF: predicated region fallthrough
CT: control target
= control target key end

     0   :  { %s432_s12 = smov 0   ;;  %s434_s13 = smov 0   ;;  %s477_s0 = inlined_call_operand.vmem [shape: f32[16,32], index: 0, kind: input, shape index: {}]   ;;  %s478_s1 = inlined_call_operand.vmem [shape: f32[32,8], index: 1, kind: input, shape index: {}]   ;;  %s479_s2 = inlined_call_operand.vmem [shape: f32[1,8], index: 2, kind: input, shape index: {}]   ;;  %s480_s3 = inlined_call_operand.vmem [shape: f32[16,8], index: 3, kind: output, shape index: {}]  }
   0x1   :  { %s436_s14 = smov 0  }
   0x2 LB: > { %s25_s15 = sadd.s32 1, %s406_s13  ;;  %p357_p0 = scmp.ge.s32.totalorder %s410_s14, 1  ;;  %s410_s14 = sphi %s436_s14, %s13_s14   ;;  %s406_s13 = sphi %s434_s13, %s482_s13   ;;  %s402_s12 = sphi %s432_s12, %s481_s12  }
   0x3   : > { %p27_p1 = scmp.ge.s32.totalorder %s25_s15, 2  ;;  %p167_p2 = scmp.lt.s32.totalorder %s410_s14, 3 }
   0x5   : > { %s484_s15 = smov (%p27_p1, %s25_s15), 0  ;;  %p168_p3 = pnand %p357_p0, %p167_p2 }
   0x6   : > { %p199_p4 = scmp.lt.s32.totalorder (!%p168_p3), %s402_s12, 1 }
   0x7   : > { %171 = sbr.rel (%p168_p3) target bundleno = 149 (0x95), region = 32 }
   0xc   : > { %v221_v0 = vld [vmem:[%s478_s1 + $0x18] sm:$0xff]  ;;  %v220_v1 = vld [vmem:[%s478_s1 + $0x10] sm:$0xff]  ;;  %v219_v2 = vld [vmem:[%s478_s1 + $0x8] sm:$0xff]  ;;  %s486_s12 = smov (!%p199_p4, %s402_s12), 1  ;;  %vm226_vm0 = vcmask 261120   ;;  %vm250_vm1 = vcmask 64512  }
   0xd   : > { %242 = vmatpush.msra.mxu0 %v221_v0  ;;  %v218_v3 = vld [vmem:[%s478_s1] sm:$0xff]  ;;  %s358_s24 = sshll.u32 %s486_s12, 3 }
   0xe   : > { %s202_s27 = scalar_lea.vmem %s477_s0, %s358_s24  ;;  %v387_v5 = vld [vmem:[%s479_s2] ss:$0 sm:$0xff]  ;;  %s216_s5 = scalar_lea.vmem %s480_s3, %s358_s24 }
   0xf   : > { %243 = vmatpush.msra.mxu0 %v220_v1  ;;  %v217_v4 = vld [vmem:[%s202_s27] sm:$0xff] }
  0x11   : > { %244 = vmatpush.msra.mxu0 %v219_v2 }
  0x13   : > { %245 = vmatpush.msra.mxu0 %v218_v3 }
  0x14   : > { %360 = vmatmul.msk.f32.vlgmr.msra.gmra.mxu0 %vm226_vm0, %v217_v4 }
  0x91   : > { %v247_v6 = vpop.f32.mrf.mxu0 }
  0x92   : > { %v248_v7 = vadd.f32 %v387_v5, %v247_v6 }
  0x94   : > { %251 = vst.msk [vmem:[%s216_s5] sm:$0xff] %vm250_vm1, %v248_v7 }
  0x95 PF: > { %s13_s14 = sadd.s32 1, %s410_s14   ;;  %s481_s12 = smov %s406_s13 }
  0x96   : > { %p10_p5 = scmp.ge.s32.totalorder %s13_s14, 4   ;;  %s482_s13 = smov %s484_s15 }
  0x98   :  { %12 = sbr.rel (!%p10_p5) target bundleno = 2 (0x2), region = 68 }

// kernel: tpu_custom_call.1
= control target key start
LH: loop header
LB: loop body
LE: loop exit
PB: predicated region body
PF: predicated region fallthrough
CT: control target
= control target key end

     0   :  { %s432_s12 = smov 0   ;;  %s434_s13 = smov 0   ;;  %s477_s0 = inlined_call_operand.vmem [shape: f32[16,32], index: 0, kind: input, shape index: {}]   ;;  %s478_s1 = inlined_call_operand.vmem [shape: f32[32,8], index: 1, kind: input, shape index: {}]   ;;  %s479_s2 = inlined_call_operand.vmem [shape: f32[1,8], index: 2, kind: input, shape index: {}]   ;;  %s480_s3 = inlined_call_operand.vmem [shape: f32[16,8], index: 3, kind: output, shape index: {}]  }
   0x1   :  { %s436_s14 = smov 0  }
   0x2 LB: > { %s25_s15 = sadd.s32 1, %s406_s13  ;;  %p357_p0 = scmp.ge.s32.totalorder %s410_s14, 1  ;;  %s410_s14 = sphi %s436_s14, %s13_s14   ;;  %s406_s13 = sphi %s434_s13, %s482_s13   ;;  %s402_s12 = sphi %s432_s12, %s481_s12  }
   0x3   : > { %p27_p1 = scmp.ge.s32.totalorder %s25_s15, 2  ;;  %p167_p2 = scmp.lt.s32.totalorder %s410_s14, 3 }
   0x5   : > { %s484_s15 = smov (%p27_p1, %s25_s15), 0  ;;  %p168_p3 = pnand %p357_p0, %p167_p2 }
   0x6   : > { %p199_p4 = scmp.lt.s32.totalorder (!%p168_p3), %s402_s12, 1 }
   0x7   : > { %171 = sbr.rel (%p168_p3) target bundleno = 149 (0x95), region = 32 }
   0xc   : > { %v221_v0 = vld [vmem:[%s478_s1 + $0x18] sm:$0xff]  ;;  %v220_v1 = vld [vmem:[%s478_s1 + $0x10] sm:$0xff]  ;;  %v219_v2 = vld [vmem:[%s478_s1 + $0x8] sm:$0xff]  ;;  %s486_s12 = smov (!%p199_p4, %s402_s12), 1  ;;  %vm226_vm0 = vcmask 261120   ;;  %vm250_vm1 = vcmask 64512  }
   0xd   : > { %242 = vmatpush.msra.mxu0 %v221_v0  ;;  %v218_v3 = vld [vmem:[%s478_s1] sm:$0xff]  ;;  %s358_s24 = sshll.u32 %s486_s12, 3 }
   0xe   : > { %s202_s27 = scalar_lea.vmem %s477_s0, %s358_s24  ;;  %v387_v5 = vld [vmem:[%s479_s2] ss:$0 sm:$0xff]  ;;  %s216_s5 = scalar_lea.vmem %s480_s3, %s358_s24 }
   0xf   : > { %243 = vmatpush.msra.mxu0 %v220_v1  ;;  %v217_v4 = vld [vmem:[%s202_s27] sm:$0xff] }
  0x11   : > { %244 = vmatpush.msra.mxu0 %v219_v2 }
  0x13   : > { %245 = vmatpush.msra.mxu0 %v218_v3 }
  0x14   : > { %360 = vmatmul.msk.f32.vlgmr.msra.gmra.mxu0 %vm226_vm0, %v217_v4 }
  0x91   : > { %v247_v6 = vpop.f32.mrf.mxu0 }
  0x92   : > { %v248_v7 = vadd.f32 %v387_v5, %v247_v6 }
  0x94   : > { %251 = vst.msk [vmem:[%s216_s5] sm:$0xff] %vm250_vm1, %v248_v7 }
  0x95 PF: > { %s13_s14 = sadd.s32 1, %s410_s14   ;;  %s481_s12 = smov %s406_s13 }
  0x96   : > { %p10_p5 = scmp.ge.s32.totalorder %s13_s14, 4   ;;  %s482_s13 = smov %s484_s15 }
  0x98   :  { %12 = sbr.rel (!%p10_p5) target bundleno = 2 (0x2), region = 68 }

</bundles_post_ra>
